<compile_context>
chip_gen: v7x
topology: tpu7x:2x2x1
jax: 0.10.0
libtpu: 0.0.40
codegen_flags: <defaults>
</compile_context>

<pallas_src>
import jax
import jax.numpy as jnp
from jax.experimental import pallas as pl
from jax.experimental.pallas import tpu as pltpu

NEG_FILL = -1.0e30  # padded-logit bias: exp(NEG_FILL - m) underflows to 0 in the softmax


# ---------------------------------------------------------------------------
# Kernel
# ---------------------------------------------------------------------------
def qnetwork_kernel(x_ref, w1_ref, b1_ref, w2_ref, b2_ref, w3_ref, b3_ref, out_ref):
    bf16 = jnp.bfloat16
    # x arrives f32; cast in-kernel (VPU) so the wrapper never materializes a bf16 copy.
    x = x_ref[...].astype(bf16)
    # fc1 + ReLU (bf16 operands, f32 MXU accumulation)
    h1 = jnp.dot(x, w1_ref[...], preferred_element_type=jnp.float32)
    h1 = jnp.maximum(h1 + b1_ref[...], 0.0)
    # fc2 + ReLU
    h2 = jnp.dot(h1.astype(bf16), w2_ref[...], preferred_element_type=jnp.float32)
    h2 = jnp.maximum(h2 + b2_ref[...], 0.0)
    # fc3 (output lane-padded to a multiple of 128; padded bias = NEG_FILL)
    logits = jnp.dot(h2.astype(bf16), w3_ref[...], preferred_element_type=jnp.float32)
    logits = logits + b3_ref[...]
    # numerically stable softmax over the (padded) last dim
    m = jnp.max(logits, axis=-1, keepdims=True)
    e = jnp.exp(logits - m)
    denom = jnp.sum(e, axis=-1, keepdims=True)
    r = pl.reciprocal(denom, approx=True)      # EUP vrcp (slot otherwise idle)
    r = r * (2.0 - denom * r)                  # one Newton step -> ~exact 1/denom
    out_ref[...] = (e * r).astype(out_ref.dtype)


# ---------------------------------------------------------------------------
# One-time parameter preparation (hoisted out of the per-call forward path)
# ---------------------------------------------------------------------------
def prepare_params(params):
    """Cast/pad weights once at init.  Returns a tuple consumed by qnetwork_forward."""
    w1, b1, w2, b2, w3, b3 = params
    H, n_out = w3.shape
    n_pad = max(128, ((n_out + 127) // 128) * 128)   # lane-dense output width
    bf16 = jnp.bfloat16

    w1b = jnp.asarray(w1, bf16)
    w2b = jnp.asarray(w2, bf16)
    # pad fc3 weight with zero columns, fc3 bias with NEG_FILL -> padded softmax lanes = 0
    w3b = jnp.zeros((H, n_pad), bf16).at[:, :n_out].set(w3.astype(bf16))
    b3p = jnp.full((1, n_pad), NEG_FILL, jnp.float32).at[:, :n_out].set(b3)
    b1f = jnp.asarray(b1, jnp.float32)
    b2f = jnp.asarray(b2, jnp.float32)
    return (w1b, b1f, w2b, b2f, w3b, b3p, int(n_out))


# ---------------------------------------------------------------------------
# Tile selection: fewest, fattest grid steps, but >=2 so v7x megacore gets work.
# ---------------------------------------------------------------------------
def _choose_tile(batch, block_batch, min_grid_steps):
    cap = max(8, min(block_batch, 4096))     # ~few KiB/row double-buffered: safe on v5e's 16 MiB
    if batch <= 8 or min_grid_steps <= 1:
        return min(batch, cap)
    tb = pl.cdiv(batch, min_grid_steps)
    tb = ((tb + 7) // 8) * 8                 # sublane multiple -> satisfies (8,128) constraint
    return min(max(tb, 8), cap, batch)


# ---------------------------------------------------------------------------
# Forward wrapper
# ---------------------------------------------------------------------------
def qnetwork_forward(x, prepared, *, block_batch=2048, min_grid_steps=2):
    """x: (B, input_dims) f32.  prepared: output of prepare_params.  Returns (B, n_outputs) f32."""
    w1b, b1, w2b, b2, w3b, b3p, n_out = prepared
    B, D = x.shape
    H = w1b.shape[1]
    n_pad = w3b.shape[1]

    tb = _choose_tile(B, block_batch, min_grid_steps)
    grid = (pl.cdiv(B, tb),)

    flops = 2 * B * (D * H + H * H + H * n_pad)
    bytes_accessed = (
        x.size * 4 + w1b.size * 2 + w2b.size * 2 + w3b.size * 2
        + (b1.size + b2.size + b3p.size) * 4
        + B * n_pad * 4
    )

    out_padded = pl.pallas_call(
        qnetwork_kernel,
        out_shape=jax.ShapeDtypeStruct((B, n_pad), jnp.float32),
        grid=grid,
        in_specs=[
            pl.BlockSpec((tb, D), lambda i: (i, 0)),       # x (f32): streamed per batch tile
            pl.BlockSpec((D, H), lambda i: (0, 0)),        # w1 (bf16): resident
            pl.BlockSpec((1, H), lambda i: (0, 0)),        # b1: resident
            pl.BlockSpec((H, H), lambda i: (0, 0)),        # w2 (bf16): resident
            pl.BlockSpec((1, H), lambda i: (0, 0)),        # b2: resident
            pl.BlockSpec((H, n_pad), lambda i: (0, 0)),    # w3 (bf16, padded): resident
            pl.BlockSpec((1, n_pad), lambda i: (0, 0)),    # b3 (padded): resident
        ],
        out_specs=pl.BlockSpec((tb, n_pad), lambda i: (i, 0)),
        compiler_params=pltpu.CompilerParams(
            dimension_semantics=("parallel",),             # megacore sharding on v7x
        ),
        cost_estimate=pl.CostEstimate(
            flops=flops,
            transcendentals=B * n_pad,
            bytes_accessed=bytes_accessed,
        ),
    )(x, w1b, b1, w2b, b2, w3b, b3p)

    return out_padded[:, :n_out]


# ---------------------------------------------------------------------------
# Init + references
# ---------------------------------------------------------------------------
def init_params(key, input_dims, hidden, n_outputs):
    """Deterministic init mimicking nn.Linear default: U(-1/sqrt(fan_in), 1/sqrt(fan_in))."""
    ks = jax.random.split(key, 6)

    def linear(kw, kb, fan_in, fan_out):
        bound = 1.0 / jnp.sqrt(float(fan_in))
        w = jax.random.uniform(kw, (fan_in, fan_out), jnp.float32, -bound, bound)
        b = jax.random.uniform(kb, (1, fan_out), jnp.float32, -bound, bound)
        return w, b

    w1, b1 = linear(ks[0], ks[1], input_dims, hidden)
    w2, b2 = linear(ks[2], ks[3], hidden, hidden)
    w3, b3 = linear(ks[4], ks[5], hidden, n_outputs)
    return (w1, b1, w2, b2, w3, b3)


def reference_forward_matched(x, params):
    """Pure-JAX reference with the same bf16-operand / f32-accumulate precision as the kernel."""
    w1, b1, w2, b2, w3, b3 = params
    bf16 = jnp.bfloat16
    h1 = jax.nn.relu(
        jnp.dot(x.astype(bf16), w1.astype(bf16), preferred_element_type=jnp.float32) + b1)
    h2 = jax.nn.relu(
        jnp.dot(h1.astype(bf16), w2.astype(bf16), preferred_element_type=jnp.float32) + b2)
    logits = jnp.dot(h2.astype(bf16), w3.astype(bf16), preferred_element_type=jnp.float32) + b3
    return jax.nn.softmax(logits, axis=-1)


def reference_forward_f32(x, params):
    w1, b1, w2, b2, w3, b3 = params
    h1 = jax.nn.relu(x @ w1 + b1)
    h2 = jax.nn.relu(h1 @ w2 + b2)
    return jax.nn.softmax(h2 @ w3 + b3, axis=-1)


if __name__ == "__main__":
    key = jax.random.PRNGKey(0)
    k_params, k_x = jax.random.split(key)

    batch = 256        # 2 grid steps of 128 rows -> exercises pipelining + v7x megacore path
    input_dims = 8     # Qnetwork(input_dims=(8,))
    hidden = 256       # module default; fills the 256-wide MXU on v6e/v7x
    n_outputs = 4

    params = init_params(k_params, input_dims, hidden, n_outputs)
    prepared = prepare_params(params)          # one-time cast/pad, NOT in the forward path
    x = jax.random.normal(k_x, (batch, input_dims), jnp.float32)

    out = qnetwork_forward(x, prepared)
    out = jax.block_until_ready(out)

    ref = reference_forward_matched(x, params)
    ref_f32 = reference_forward_f32(x, params)

    assert out.shape == (batch, n_outputs)
    assert jnp.allclose(out, ref, atol=1e-4, rtol=1e-4), "mismatch vs precision-matched reference"
    assert jnp.allclose(out, ref_f32, atol=2e-2, rtol=2e-2), "mismatch vs f32 reference"
    assert jnp.allclose(jnp.sum(out, axis=-1), 1.0, atol=1e-5), "softmax rows must sum to 1"

    print("KERNEL_OK")
</pallas_src>

<mosaic_0001>
module attributes {stable_mosaic.version = 11 : i64} {
  func.func @qnetwork_kernel(%arg0: i32, %arg1: memref<128x8xf32, #tpu.memory_space<vmem>>, %arg2: memref<8x256xbf16, #tpu.memory_space<vmem>>, %arg3: memref<1x256xf32, #tpu.memory_space<vmem>>, %arg4: memref<256x256xbf16, #tpu.memory_space<vmem>>, %arg5: memref<1x256xf32, #tpu.memory_space<vmem>>, %arg6: memref<256x128xbf16, #tpu.memory_space<vmem>>, %arg7: memref<1x128xf32, #tpu.memory_space<vmem>>, %arg8: memref<128x128xf32, #tpu.memory_space<vmem>>) attributes {dimension_semantics = [#tpu.dimension_semantics<parallel>], iteration_bounds = array<i64: 2>, scalar_prefetch = 0 : i64, scratch_operands = 0 : i64, tpu.core_type = #tpu.core_type<tc>, window_params = [{transform_indices = @transform_0, window_bounds = array<i64: 128, 8>}, {pipeline_mode = #tpu.pipeline_mode<synchronous>, transform_indices = @transform_1, window_bounds = array<i64: 8, 256>}, {pipeline_mode = #tpu.pipeline_mode<synchronous>, transform_indices = @transform_2, window_bounds = array<i64: 1, 256>}, {pipeline_mode = #tpu.pipeline_mode<synchronous>, transform_indices = @transform_3, window_bounds = array<i64: 256, 256>}, {pipeline_mode = #tpu.pipeline_mode<synchronous>, transform_indices = @transform_4, window_bounds = array<i64: 1, 256>}, {pipeline_mode = #tpu.pipeline_mode<synchronous>, transform_indices = @transform_5, window_bounds = array<i64: 256, 128>}, {pipeline_mode = #tpu.pipeline_mode<synchronous>, transform_indices = @transform_6, window_bounds = array<i64: 1, 128>}, {transform_indices = @transform_7, window_bounds = array<i64: 128, 128>}]} {
    %c0 = arith.constant 0 : index
    %c0_0 = arith.constant 0 : index
    %0 = vector.load %arg1[%c0, %c0_0] : memref<128x8xf32, #tpu.memory_space<vmem>>, vector<128x8xf32>
    %1 = arith.truncf %0 : vector<128x8xf32> to vector<128x8xbf16>
    %c0_1 = arith.constant 0 : index
    %c0_2 = arith.constant 0 : index
    %2 = vector.load %arg2[%c0_1, %c0_2] : memref<8x256xbf16, #tpu.memory_space<vmem>>, vector<8x256xbf16>
    %cst = arith.constant dense<0.000000e+00> : vector<128x256xf32>
    %3 = tpu.matmul %1, %2, %cst {dimension_numbers = #tpu.dot_dimension_numbers<[1], [0], [0], [1], [0, 0, 1, 1], [], []>} : vector<128x8xbf16>, vector<8x256xbf16>, vector<128x256xf32> -> vector<128x256xf32>
    %c0_3 = arith.constant 0 : index
    %c0_4 = arith.constant 0 : index
    %4 = vector.load %arg3[%c0_3, %c0_4] : memref<1x256xf32, #tpu.memory_space<vmem>>, vector<1x256xf32>
    %5 = vector.broadcast %4 : vector<1x256xf32> to vector<128x256xf32>
    %6 = arith.addf %3, %5 : vector<128x256xf32>
    %cst_5 = arith.constant 0.000000e+00 : f32
    %7 = vector.broadcast %cst_5 : f32 to vector<128x256xf32>
    %8 = arith.maximumf %6, %7 : vector<128x256xf32>
    %9 = arith.truncf %8 : vector<128x256xf32> to vector<128x256xbf16>
    %c0_6 = arith.constant 0 : index
    %c0_7 = arith.constant 0 : index
    %10 = vector.load %arg4[%c0_6, %c0_7] : memref<256x256xbf16, #tpu.memory_space<vmem>>, vector<256x256xbf16>
    %cst_8 = arith.constant dense<0.000000e+00> : vector<128x256xf32>
    %11 = tpu.matmul %9, %10, %cst_8 {dimension_numbers = #tpu.dot_dimension_numbers<[1], [0], [0], [1], [0, 0, 1, 1], [], []>} : vector<128x256xbf16>, vector<256x256xbf16>, vector<128x256xf32> -> vector<128x256xf32>
    %c0_9 = arith.constant 0 : index
    %c0_10 = arith.constant 0 : index
    %12 = vector.load %arg5[%c0_9, %c0_10] : memref<1x256xf32, #tpu.memory_space<vmem>>, vector<1x256xf32>
    %13 = vector.broadcast %12 : vector<1x256xf32> to vector<128x256xf32>
    %14 = arith.addf %11, %13 : vector<128x256xf32>
    %cst_11 = arith.constant 0.000000e+00 : f32
    %15 = vector.broadcast %cst_11 : f32 to vector<128x256xf32>
    %16 = arith.maximumf %14, %15 : vector<128x256xf32>
    %17 = arith.truncf %16 : vector<128x256xf32> to vector<128x256xbf16>
    %c0_12 = arith.constant 0 : index
    %c0_13 = arith.constant 0 : index
    %18 = vector.load %arg6[%c0_12, %c0_13] : memref<256x128xbf16, #tpu.memory_space<vmem>>, vector<256x128xbf16>
    %cst_14 = arith.constant dense<0.000000e+00> : vector<128x128xf32>
    %19 = tpu.matmul %17, %18, %cst_14 {dimension_numbers = #tpu.dot_dimension_numbers<[1], [0], [0], [1], [0, 0, 1, 1], [], []>} : vector<128x256xbf16>, vector<256x128xbf16>, vector<128x128xf32> -> vector<128x128xf32>
    %c0_15 = arith.constant 0 : index
    %c0_16 = arith.constant 0 : index
    %20 = vector.load %arg7[%c0_15, %c0_16] : memref<1x128xf32, #tpu.memory_space<vmem>>, vector<1x128xf32>
    %21 = vector.broadcast %20 : vector<1x128xf32> to vector<128x128xf32>
    %22 = arith.addf %19, %21 : vector<128x128xf32>
    %cst_17 = arith.constant dense<0xFF800000> : vector<128xf32>
    %23 = vector.multi_reduction <maximumf>, %22, %cst_17 [1] : vector<128x128xf32> to vector<128xf32>
    %24 = vector.shape_cast %23 : vector<128xf32> to vector<128x1xf32>
    %25 = vector.broadcast %24 : vector<128x1xf32> to vector<128x128xf32>
    %26 = arith.subf %22, %25 : vector<128x128xf32>
    %27 = math.exp %26 : vector<128x128xf32>
    %cst_18 = arith.constant dense<0.000000e+00> : vector<128xf32>
    %28 = vector.multi_reduction <add>, %27, %cst_18 [1] : vector<128x128xf32> to vector<128xf32>
    %29 = vector.shape_cast %28 : vector<128xf32> to vector<128x1xf32>
    %30 = tpu.reciprocal %29 {approx = true} : vector<128x1xf32> -> vector<128x1xf32>
    %31 = arith.mulf %29, %30 : vector<128x1xf32>
    %cst_19 = arith.constant 2.000000e+00 : f32
    %32 = vector.broadcast %cst_19 : f32 to vector<128x1xf32>
    %33 = arith.subf %32, %31 : vector<128x1xf32>
    %34 = arith.mulf %30, %33 : vector<128x1xf32>
    %35 = vector.broadcast %34 : vector<128x1xf32> to vector<128x128xf32>
    %36 = arith.mulf %27, %35 : vector<128x128xf32>
    %c0_20 = arith.constant 0 : index
    %c0_21 = arith.constant 0 : index
    %37 = vector.load %arg8[%c0_20, %c0_21] : memref<128x128xf32, #tpu.memory_space<vmem>>, vector<128x128xf32>
    tpu.vector_store %arg8[%c0_20, %c0_21], %36 {strides = array<i32>} : memref<128x128xf32, #tpu.memory_space<vmem>>, vector<128x128xf32>,
    return
  }
  func.func @transform_0(%arg0: i32) -> (i32, i32) {
    %c0_i32 = arith.constant 0 : i32
    %c0_i32_0 = arith.constant 0 : i32
    return %arg0, %c0_i32 : i32, i32
  }
  func.func @transform_1(%arg0: i32) -> (i32, i32) {
    %c0_i32 = arith.constant 0 : i32
    %c0_i32_0 = arith.constant 0 : i32
    %c0_i32_1 = arith.constant 0 : i32
    return %c0_i32, %c0_i32_0 : i32, i32
  }
  func.func @transform_2(%arg0: i32) -> (i32, i32) {
    %c0_i32 = arith.constant 0 : i32
    %c0_i32_0 = arith.constant 0 : i32
    %c0_i32_1 = arith.constant 0 : i32
    return %c0_i32, %c0_i32_0 : i32, i32
  }
  func.func @transform_3(%arg0: i32) -> (i32, i32) {
    %c0_i32 = arith.constant 0 : i32
    %c0_i32_0 = arith.constant 0 : i32
    %c0_i32_1 = arith.constant 0 : i32
    return %c0_i32, %c0_i32_0 : i32, i32
  }
  func.func @transform_4(%arg0: i32) -> (i32, i32) {
    %c0_i32 = arith.constant 0 : i32
    %c0_i32_0 = arith.constant 0 : i32
    %c0_i32_1 = arith.constant 0 : i32
    return %c0_i32, %c0_i32_0 : i32, i32
  }
  func.func @transform_5(%arg0: i32) -> (i32, i32) {
    %c0_i32 = arith.constant 0 : i32
    %c0_i32_0 = arith.constant 0 : i32
    %c0_i32_1 = arith.constant 0 : i32
    return %c0_i32, %c0_i32_0 : i32, i32
  }
  func.func @transform_6(%arg0: i32) -> (i32, i32) {
    %c0_i32 = arith.constant 0 : i32
    %c0_i32_0 = arith.constant 0 : i32
    %c0_i32_1 = arith.constant 0 : i32
    return %c0_i32, %c0_i32_0 : i32, i32
  }
  func.func @transform_7(%arg0: i32) -> (i32, i32) {
    %c0_i32 = arith.constant 0 : i32
    %c0_i32_0 = arith.constant 0 : i32
    return %arg0, %c0_i32 : i32, i32
  }
}

</mosaic_0001>

<bundles_post_ra>
// kernel: tpu_custom_call.1
= control target key start
LH: loop header
LB: loop body
LE: loop exit
PB: predicated region body
PF: predicated region fallthrough
CT: control target
= control target key end

     0   :  { %12 = vsyncpa [#allocation3], 0  ;;  %s2423_s0 = inlined_call_operand.vmem [shape: f32[256,8], index: 0, kind: input, shape index: {}]   ;;  %s2424_s1 = inlined_call_operand.vmem [shape: bf16[8,256], index: 1, kind: input, shape index: {}]   ;;  %s2425_s2 = inlined_call_operand.vmem [shape: f32[1,256], index: 2, kind: input, shape index: {}]   ;;  %s2426_s3 = inlined_call_operand.vmem [shape: bf16[256,256], index: 3, kind: input, shape index: {}]   ;;  %s2427_s4 = inlined_call_operand.vmem [shape: f32[1,256], index: 4, kind: input, shape index: {}]   ;;  %s2428_s5 = inlined_call_operand.hbm [shape: bf16[256,128], index: 5, kind: input, shape index: {}]   ;;  %s2429_s6 = inlined_call_operand.vmem [shape: f32[1,128], index: 6, kind: input, shape index: {}]   ;;  %s2430_s7 = inlined_call_operand.hbm [shape: f32[256,128], index: 7, kind: output, shape index: {}]  }
   0x1   :  { %13 = vsyncpa [#allocation4], 0 }
   0x2   :  { %15 = vsyncpa [#allocation4 + $0x1], 0  ;;  %s1891_s24 = smov 0   ;;  %s1893_s25 = smov 0  }
   0x3   :  { %s1895_s26 = smov 0   ;;  %s1897_s27 = smov 0  }
   0x4 LB: > { %s1912_s28 = sadd.s32 4294967295, %s1842_s27   ;;  %s1424_s29 = sadd.s32 4294967294, %s1842_s27   ;;  %s1842_s27 = sphi %s1897_s27, %s2446_s27   ;;  %s1838_s26 = sphi %s1895_s26, %s2445_s26   ;;  %s1834_s25 = sphi %s1893_s25, %s2444_s25   ;;  %s1830_s24 = sphi %s1891_s24, %s2443_s24  }
   0x5   : > { %s1916_s30 = sadd.s32 1, %s1842_s27   ;;  %s180_s8 = sadd.s32 1, %s1838_s26 }
   0x6   : > { %s177_s9 = ssub.s32 %s1842_s27, %s1916_s30  ;;  %p190_p0 = scmp.ne.s32.totalorder %s1838_s26, %s1834_s25 }
   0x7   : > { %p178_p1 = scmp.eq.s32.totalorder %s177_s9, 0  ;;  %p191_p2 = scmp.eq.s32.totalorder %s1912_s28, 1 }
   0x8   : > { %p196_p3 = scmp.ne.s32.totalorder %s1834_s25, %s1830_s24  ;;  %p197_p4 = scmp.eq.s32.totalorder %s1424_s29, 1 }
   0x9   : > { %s1927_s10 = scalar_select %p178_p1, %s1838_s26, %s180_s8  }
   0xa   : > { %p1929_p5 = por %p191_p2, %p190_p0  ;;  %p1933_p6 = por %p197_p4, %p196_p3 }
   0xb   : > { %p1425_p7 = scmp.ge.s32.totalorder %s1842_s27, 1  ;;  %p204_p8 = scmp.lt.s32.totalorder %s1842_s27, 3 }
   0xc   : > { %s2434_s11 = scalar_select %p1929_p5, 1, 0 }
   0xd   : > { %s2435_s12 = scalar_select %p1933_p6, 1, 0 }
   0xe   : > { %p2431_p9 = scmp.eq.s32.totalorder %s1912_s28, 0  ;;  %p1940_p10 = pnand %p1425_p7, %p204_p8 }
   0xf   : > { %s1844_s14 = smov [#allocation2]   ;;  %s1748_s19 = scalar_lea.hbm %s2428_s5, 2048 }
  0x10   : > { %s2436_s13 = scalar_select %p1940_p10, 1, 0 }
  0x11   : > { %s228_s15 = sshll.u32 %s1844_s14, 4  ;;  %p1569_p11 = pneg %p1940_p10  ;;  %s229_s15 = int_to_ptr.vmem [resolvable:$true] %s228_s15 }
  0x12   : > { %p1749_p13 = scmp.ne.s32.totalorder %s2428_s5, %s1748_s19  ;;  %p1755_p3 = scmp.lt.u32.totalorder %s1748_s19, %s2428_s5 }
  0x13   : > { %p1948_p12 = pnand %p2431_p9, %p1569_p11 }
  0x15   : > { %p1750_p0 = pneg %p1948_p12 }
  0x17   : > { %p1751_p1 = pnand %p1750_p0, %p1749_p13 }
  0x19   : > { %p1752_p2 = pneg %p1751_p1 }
  0x1b   : > { %p1757_p4 = pnand %p1755_p3, %p1752_p2 }
  0x1d   : > { %1760 = shalt.err (!%p1757_p4)
}
  0x1e   : > { %s1761_s29 = scalar_lea.vmem %s229_s15, 2048  ;;  %p1769_p9 = scmp.lt.s32.totalorder %s229_s15, %s229_s15 }
  0x1f   : > { %p1762_p7 = scmp.ne.s32.totalorder %s229_s15, %s1761_s29  ;;  %p1770_p6 = scmp.lt.s32.totalorder %s1761_s29, %s1761_s29 }
  0x21   : > { %p1764_p8 = pnand %p1762_p7, %p1750_p0  ;;  %p1771_p5 = por %p1770_p6, %p1769_p9 }
  0x23   : > { %p1765_p11 = pneg %p1764_p8 }
  0x25   : > { %p1772_p10 = pnand %p1771_p5, %p1765_p11 }
  0x27   : > { %1775 = shalt.err (!%p1772_p10)
}
  0x28   : > { %s1845_s8 = smov 64   ;;  %s1846_s9 = smov 4  }
  0x29   : > { %1572 = dma.hbm_to_vmem [thread:$0]  (!%p1948_p12), %s2428_s5, 2048, %s229_s15, [#allocation3], %s1845_s8, %s1845_s8, %s1846_s9  }
  0x2a   : > { %p2438_p13 = scmp.ne.s32.totalorder %s2436_s13, 0 }
  0x2b   : > { %p2439_p1 = scmp.eq.s32.totalorder (!%p2438_p13), %s1912_s28, 0 }
  0x2c   : > { %256 = sbr.rel (%p2438_p13) target bundleno = 1113 (0x459), region = 48 }
  0x33   : > { %1821 = dma.done.wait (%p2439_p1), [#allocation3], 2048   ;;  %p2440_p0 = pmov %p2439_p1 }
  0x34   : > { %s1431_s18 = sshll.u32 %s1912_s28, 4  ;;  %v1847_v0 = vmov 0   ;;  %v320_v1 = vld [vmem:[%s2424_s1] sm:$0xff]  ;;  %vm363_vm0 = vcmask 1043456   ;;  %vm338_vm1 = vcmask 64512   ;;  %v1670_v63 = vld [vmem:[#allocation2 + $0x48] sm:$0xff]  }
  0x35   : > { %1823 = vsyncadd (%p2440_p0), [#allocation3], 4294965248  ;;  %402 = vmatprep.mubr.bf16.mxu0 %v1847_v0  ;;  %p289_p5 = scmp.lt.s32.totalorder %s1431_s18, 31  ;;  %v1434_v4 = vcombine.high %v320_v1, %v320_v1  ;;  %v1433_v5 = vcombine.low %v320_v1, %v320_v1  ;;  %v1620_v9 = vld [vmem:[%s2426_s3 + $0x4] ss:$8 sps:$4 sm:$0xff]   ;;  %v1672_v1 = vld [vmem:[#allocation2 + $0x50] sm:$0xff]  }
  0x36   : > { %v1622_v10 = vld [vmem:[%s2426_s3] ss:$8 sps:$4 sm:$0xff]   ;;  %v1623_v11 = vld [vmem:[%s2426_s3 + $0x14] ss:$8 sps:$4 sm:$0xff]   ;;  %735 = vmatprep.subr.bf16.mxu1 %v1620_v9  ;;  %v1625_v13 = vld [vmem:[%s2426_s3 + $0x10] ss:$8 sps:$4 sm:$0xff]  }
  0x37   : > { %s2448_s18 = smov (!%p289_p5, %s1431_s18), 31  ;;  %1435 = vmatprep.subr.msk.bf16.mxu0 %vm363_vm0, %v1434_v4  ;;  %v365_v6 = vsel %vm363_vm0, %v1433_v5, 0  ;;  %736 = vmatpush1.bf16.msra.mxu1 %v1622_v10  ;;  %v1626_v14 = vld [vmem:[%s2426_s3 + $0x24] ss:$8 sps:$4 sm:$0xff]   ;;  %v1628_v16 = vld [vmem:[%s2426_s3 + $0x20] ss:$8 sps:$4 sm:$0xff]  }
  0x38   : > { %s1432_s16 = sshll.u32 %s2448_s18, 3  ;;  %371 = vmatpush1.bf16.msra.mxu0 %v365_v6  ;;  %737 = vmatprep.subr.bf16.mxu1 %v1623_v11  ;;  %v1629_v17 = vld [vmem:[%s2426_s3 + $0x34] ss:$8 sps:$4 sm:$0xff]   ;;  %v1631_v20 = vld [vmem:[%s2426_s3 + $0x30] ss:$8 sps:$4 sm:$0xff]   ;;  %v1668_v61 = vld [vmem:[#allocation2 + $0x40] sm:$0xff]   ;;  %v323_v11 = vlaneseq }
  0x39   : > { %s1979_s15 = scalar_lea.vmem %s2423_s0, %s1432_s16  ;;  %v1632_v21 = vld [vmem:[%s2426_s3 + $0x44] ss:$8 sps:$4 sm:$0xff]   ;;  %v1634_v23 = vld [vmem:[%s2426_s3 + $0x40] ss:$8 sps:$4 sm:$0xff]   ;;  %v1635_v26 = vld [vmem:[%s2426_s3 + $0x54] ss:$8 sps:$4 sm:$0xff]   ;;  %1499 = vmatprep.subr.bf16.mxu0 %v1668_v61 }
  0x3a   : > { %v296_v2 = vld [vmem:[%s1979_s15] sm:$0xff]  ;;  %v297_v3 = vld [vmem:[%s1979_s15 + $0x8] sm:$0xff]  ;;  %v298_v8 = vld [vmem:[%s1979_s15 + $0x10] sm:$0xff]  ;;  %s285_s9 = sand.u32 1, %s1834_s25   ;;  %s1498_s18 = sshll.u32 %s1912_s28, 11 }
  0x3b   : > { %v312_v7 = vpack.c.bf16 %v297_v3, %v296_v2  ;;  %v299_v12 = vld [vmem:[%s1979_s15 + $0x18] sm:$0xff]  ;;  %738 = vmatpush1.bf16.msra.mxu1 %v1625_v13  ;;  %v300_v18 = vld [vmem:[%s1979_s15 + $0x20] sm:$0xff]  ;;  %v301_v19 = vld [vmem:[%s1979_s15 + $0x28] sm:$0xff]  ;;  %s1430_s14 = sshll.u32 %s285_s9, 7  ;;  %s2373_s20 = scalar_lea.hbm %s2430_s7, %s1498_s18 }
  0x3c   : > { %v313_v15 = vpack.c.bf16 %v299_v12, %v298_v8  ;;  %739 = vmatprep.subr.bf16.mxu1 %v1626_v14  ;;  %v314_v22 = vpack.c.bf16 %v301_v19, %v300_v18  ;;  %v302_v24 = vld [vmem:[%s1979_s15 + $0x30] sm:$0xff]  ;;  %v303_v25 = vld [vmem:[%s1979_s15 + $0x38] sm:$0xff]  ;;  %v1638_v28 = vld [vmem:[%s2426_s3 + $0x64] ss:$8 sps:$4 sm:$0xff]   ;;  %v2111_v12 = vshrl.u32 %v323_v11, 7  ;;  %s2338_s17 = scalar_lea.vmem [#allocation5], %s1430_s14 }
  0x3d   : > { %1436 = vmatmul.mubr.msk.bf16.vlgmr.msra.gmra.mrb[0].mxu0 %vm338_vm1, %v312_v7  ;;  %v1637_v27 = vld [vmem:[%s2426_s3 + $0x50] ss:$8 sps:$4 sm:$0xff]   ;;  %v315_v29 = vpack.c.bf16 %v303_v25, %v302_v24  ;;  %v1640_v30 = vld [vmem:[%s2426_s3 + $0x60] ss:$8 sps:$4 sm:$0xff]   ;;  %v1641_v31 = vld [vmem:[%s2426_s3 + $0x74] ss:$8 sps:$4 sm:$0xff]  }
  0x3e   : > { %412 = vmatprep.mubr.bf16.mxu0 %v1847_v0  ;;  %v304_v32 = vld [vmem:[%s1979_s15 + $0x40] sm:$0xff]  ;;  %v305_v33 = vld [vmem:[%s1979_s15 + $0x48] sm:$0xff]  ;;  %v1643_v34 = vld [vmem:[%s2426_s3 + $0x70] ss:$8 sps:$4 sm:$0xff]   ;;  %v325_v13 = vsub.s32 0, %v2111_v12  ;;  %s2382_s28 = scalar_lea.sflag [#allocation4], %s285_s9 }
  0x3f   : > { %740 = vmatpush1.bf16.msra.mxu1 %v1628_v16  ;;  %v1644_v35 = vld [vmem:[%s2426_s3 + $0x84] ss:$8 sps:$4 sm:$0xff]   ;;  %v316_v36 = vpack.c.bf16 %v305_v33, %v304_v32  ;;  %v1646_v37 = vld [vmem:[%s2426_s3 + $0x80] ss:$8 sps:$4 sm:$0xff]   ;;  %v1647_v38 = vld [vmem:[%s2426_s3 + $0x94] ss:$8 sps:$4 sm:$0xff]  }
  0x40   : > { %741 = vmatprep.subr.bf16.mxu1 %v1629_v17  ;;  %v306_v39 = vld [vmem:[%s1979_s15 + $0x50] sm:$0xff]  ;;  %v307_v40 = vld [vmem:[%s1979_s15 + $0x58] sm:$0xff]  ;;  %v1650_v42 = vld [vmem:[%s2426_s3 + $0xa4] ss:$8 sps:$4 sm:$0xff]   ;;  %p2441_p9 = scmp.ne.s32.totalorder %s2434_s11, 0  ;;  %s1848_s21 = smov [#allocation5]  }
  0x41   : > { %v1649_v41 = vld [vmem:[%s2426_s3 + $0x90] ss:$8 sps:$4 sm:$0xff]   ;;  %v317_v43 = vpack.c.bf16 %v307_v40, %v306_v39  ;;  %v1652_v44 = vld [vmem:[%s2426_s3 + $0xa0] ss:$8 sps:$4 sm:$0xff]   ;;  %v1653_v45 = vld [vmem:[%s2426_s3 + $0xb4] ss:$8 sps:$4 sm:$0xff]  }
  0x42   : > { %v308_v46 = vld [vmem:[%s1979_s15 + $0x60] sm:$0xff]  ;;  %v309_v47 = vld [vmem:[%s1979_s15 + $0x68] sm:$0xff]  ;;  %v1655_v48 = vld [vmem:[%s2426_s3 + $0xb0] ss:$8 sps:$4 sm:$0xff]   ;;  %s1780_s22 = sshll.u32 %s1848_s21, 4  ;;  %s1781_s22 = int_to_ptr.vmem [resolvable:$false] %s1780_s22 }
  0x43   : > { %742 = vmatpush1.bf16.msra.mxu1 %v1631_v20  ;;  %v1656_v49 = vld [vmem:[%s2426_s3 + $0xc4] ss:$8 sps:$4 sm:$0xff]   ;;  %v318_v50 = vpack.c.bf16 %v309_v47, %v308_v46  ;;  %v1658_v51 = vld [vmem:[%s2426_s3 + $0xc0] ss:$8 sps:$4 sm:$0xff]   ;;  %v1659_v52 = vld [vmem:[%s2426_s3 + $0xd4] ss:$8 sps:$4 sm:$0xff]  }
  0x44   : > { %743 = vmatprep.subr.bf16.mxu1 %v1632_v21  ;;  %v310_v53 = vld [vmem:[%s1979_s15 + $0x70] sm:$0xff]  ;;  %v311_v54 = vld [vmem:[%s1979_s15 + $0x78] sm:$0xff]  ;;  %v1662_v57 = vld [vmem:[%s2426_s3 + $0xe4] ss:$8 sps:$4 sm:$0xff]   ;;  %s1350_s15 = sshll.u32 %s2338_s17, 4  ;;  %s1782_s23 = scalar_lea.vmem %s1781_s22, 4096  ;;  %s2375_s15 = int_to_ptr.vmem [resolvable:$true] %s1350_s15 }
  0x45   : > { %1437 = vmatmul.mubr.msk.bf16.gmra.mrb[4].mxu0 %vm338_vm1, %v313_v15  ;;  %v319_v55 = vpack.c.bf16 %v311_v54, %v310_v53  ;;  %v1661_v56 = vld [vmem:[%s2426_s3 + $0xd0] ss:$8 sps:$4 sm:$0xff]   ;;  %v1664_v58 = vld [vmem:[%s2426_s3 + $0xe0] ss:$8 sps:$4 sm:$0xff]   ;;  %v1665_v59 = vld [vmem:[%s2426_s3 + $0xf4] ss:$8 sps:$4 sm:$0xff]   ;;  %p1783_p2 = scmp.lt.s32.totalorder %s2375_s15, %s1781_s22 }
  0x46   : > { %422 = vmatprep.mubr.bf16.mxu0 %v1847_v0  ;;  %v1667_v60 = vld [vmem:[%s2426_s3 + $0xf0] ss:$8 sps:$4 sm:$0xff]   ;;  %v1669_v62 = vld [vmem:[#allocation2] sm:$0xff]   ;;  %v1678_v7 = vld [vmem:[#allocation2 + $0x68] sm:$0xff]   ;;  %v329_v15 = vsub.s32 1, %v2111_v12  ;;  %s1776_s13 = scalar_lea.vmem %s2375_s15, 2048 }
  0x47   : > { %744 = vmatpush1.bf16.msra.mxu1 %v1634_v23  ;;  %1500 = vmatpush3.bf16.msra.mxu0 %v1669_v62  ;;  %v1673_v2 = vld [vmem:[#allocation2 + $0x10] sm:$0xff]   ;;  %v1674_v3 = vld [vmem:[#allocation2 + $0x58] sm:$0xff]   ;;  %v1676_v5 = vld [vmem:[#allocation2 + $0x60] sm:$0xff]   ;;  %p1777_p6 = scmp.ne.s32.totalorder %s2375_s15, %s1776_s13  ;;  %p1784_p3 = scmp.lt.s32.totalorder %s1782_s23, %s1776_s13 }
  0x48   : > { %745 = vmatprep.subr.bf16.mxu1 %v1635_v26  ;;  %1501 = vmatprep.subr.bf16.mxu0 %v1670_v63  ;;  %v1675_v4 = vld [vmem:[#allocation2 + $0x18] sm:$0xff]   ;;  %v1677_v6 = vld [vmem:[#allocation2 + $0x20] sm:$0xff]   ;;  %v1679_v8 = vld [vmem:[#allocation2 + $0x28] sm:$0xff]  }
  0x49   : > { %v1680_v9 = vld [vmem:[#allocation2 + $0x70] sm:$0xff]   ;;  %v321_v14 = vld [vmem:[%s2425_s2] sm:$0x3]  ;;  %p1778_p10 = pnand %p1777_p6, %p2441_p9  ;;  %p1785_p4 = por %p1784_p3, %p1783_p2 }
  0x4a   : > { %v1681_v10 = vld [vmem:[#allocation2 + $0x30] sm:$0xff]   ;;  %v2120_v16 = vrot.slane %v321_v14, %v325_v13  ;;  %v2124_v17 = vrot.slane %v321_v14, %v329_v15 }
  0x4b   : > { %746 = vmatpush1.bf16.msra.mxu1 %v1637_v27  ;;  %p1779_p12 = pneg %p1778_p10 }
  0x4c   : > { %747 = vmatprep.subr.bf16.mxu1 %v1638_v28 }
  0x4d   : > { %1438 = vmatmul.mubr.msk.bf16.gmra.mrb[8].mxu0 %vm338_vm1, %v314_v22  ;;  %p1786_p7 = pnand %p1785_p4, %p1779_p12 }
  0x4e   : > { %432 = vmatprep.mubr.bf16.mxu0 %v1847_v0 }
  0x4f   : > { %748 = vmatpush1.bf16.msra.mxu1 %v1640_v30 }
  0x50   : > { %749 = vmatprep.subr.bf16.mxu1 %v1641_v31 }
  0x53   : > { %750 = vmatpush1.bf16.msra.mxu1 %v1643_v34 }
  0x54   : > { %751 = vmatprep.subr.bf16.mxu1 %v1644_v35 }
  0x55   : > { %1439 = vmatmul.mubr.msk.bf16.gmra.mrb[12].mxu0 %vm338_vm1, %v315_v29 }
  0x56   : > { %442 = vmatprep.mubr.bf16.mxu0 %v1847_v0 }
  0x57   : > { %752 = vmatpush1.bf16.msra.mxu1 %v1646_v37 }
  0x58   : > { %753 = vmatprep.subr.bf16.mxu1 %v1647_v38 }
  0x5b   : > { %754 = vmatpush1.bf16.msra.mxu1 %v1649_v41 }
  0x5c   : > { %755 = vmatprep.subr.bf16.mxu1 %v1650_v42 }
  0x5d   : > { %1440 = vmatmul.mubr.msk.bf16.gmra.mrb[16].mxu0 %vm338_vm1, %v316_v36 }
  0x5e   : > { %452 = vmatprep.mubr.bf16.mxu0 %v1847_v0 }
  0x5f   : > { %756 = vmatpush1.bf16.msra.mxu1 %v1652_v44 }
  0x60   : > { %757 = vmatprep.subr.bf16.mxu1 %v1653_v45 }
  0x63   : > { %758 = vmatpush1.bf16.msra.mxu1 %v1655_v48 }
  0x64   : > { %759 = vmatprep.subr.bf16.mxu1 %v1656_v49 }
  0x65   : > { %1441 = vmatmul.mubr.msk.bf16.gmra.mrb[20].mxu0 %vm338_vm1, %v317_v43 }
  0x66   : > { %462 = vmatprep.mubr.bf16.mxu0 %v1847_v0 }
  0x67   : > { %760 = vmatpush1.bf16.msra.mxu1 %v1658_v51 }
  0x68   : > { %761 = vmatprep.subr.bf16.mxu1 %v1659_v52 }
  0x6b   : > { %762 = vmatpush1.bf16.msra.mxu1 %v1661_v56 }
  0x6c   : > { %763 = vmatprep.subr.bf16.mxu1 %v1662_v57 }
  0x6d   : > { %1442 = vmatmul.mubr.msk.bf16.gmra.mrb[24].mxu0 %vm338_vm1, %v318_v50 }
  0x6e   : > { %472 = vmatprep.mubr.bf16.mxu0 %v1847_v0  ;;  %v1671_v0 = vld [vmem:[#allocation2 + $0x8] sm:$0xff]  }
  0x6f   : > { %764 = vmatpush1.bf16.msra.mxu1 %v1664_v58  ;;  %1502 = vmatpush3.bf16.msra.mxu0 %v1671_v0 }
  0x70   : > { %765 = vmatprep.subr.bf16.mxu1 %v1665_v59  ;;  %1503 = vmatprep.subr.bf16.mxu0 %v1672_v1 }
  0x73   : > { %766 = vmatpush1.bf16.msra.mxu1 %v1667_v60  ;;  %1504 = vmatpush3.bf16.msra.mxu0 %v1673_v2 }
  0x74   : > { %1505 = vmatprep.subr.bf16.mxu0 %v1674_v3 }
  0x75   : > { %1443 = vmatmul.mubr.msk.bf16.gmra.mrb[28].mxu0 %vm338_vm1, %v319_v55 }
  0x77   : > { %1506 = vmatpush3.bf16.msra.mxu0 %v1675_v4 }
  0x78   : > { %1507 = vmatprep.subr.bf16.mxu0 %v1676_v5 }
  0x7b   : > { %1508 = vmatpush3.bf16.msra.mxu0 %v1677_v6 }
  0x7c   : > { %1509 = vmatprep.subr.bf16.mxu0 %v1678_v7 }
  0x7f   : > { %1510 = vmatpush3.bf16.msra.mxu0 %v1679_v8 }
  0x80   : > { %1511 = vmatprep.subr.bf16.mxu0 %v1680_v9 }
  0x83   : > { %1512 = vmatpush3.bf16.msra.mxu0 %v1681_v10 }
 0x110   : > { %v404_v18 = vpop.f32.mrb[0].mxu0 }
 0x111   : > { %v405_v19 = vadd.f32 %v404_v18, %v2120_v16  ;;  %v406_v20 = vpop.f32.mrb[1].mxu0 }
 0x112   : > { %v407_v21 = vadd.f32 %v406_v20, %v2124_v17  ;;  %v408_v22 = vpop.f32.mrb[2].mxu0 }
 0x113   : > { %v409_v23 = vadd.f32 %v408_v22, %v2120_v16  ;;  %v410_v24 = vpop.f32.mrb[3].mxu0  ;;  %v483_v26 = vmax.f32 %v405_v19, 0.0 }
 0x114   : > { %v411_v25 = vadd.f32 %v410_v24, %v2124_v17  ;;  %v484_v28 = vmax.f32 %v407_v21, 0.0 }
 0x115   : > { %v485_v27 = vmax.f32 %v409_v23, 0.0 }
 0x116   : > { %v486_v29 = vmax.f32 %v411_v25, 0.0 }
 0x117   : > { %v515_v30 = vpack.c.bf16 %v485_v27, %v483_v26 }
 0x118   : > { %v414_v31 = vpop.f32.mrb[4].mxu0  ;;  %v516_v32 = vpack.c.bf16 %v486_v29, %v484_v28 }
 0x119   : > { %v415_v33 = vadd.f32 %v414_v31, %v2120_v16  ;;  %v416_v34 = vpop.f32.mrb[5].mxu0 }
 0x11a   : > { %v417_v35 = vadd.f32 %v416_v34, %v2124_v17  ;;  %v418_v36 = vpop.f32.mrb[6].mxu0  ;;  %767 = vmatprep.mubr.bf16.mxu1 %v516_v32 }
 0x11b   : > { %v419_v37 = vadd.f32 %v418_v36, %v2120_v16  ;;  %v420_v38 = vpop.f32.mrb[7].mxu0  ;;  %768 = vmatmul.mubr.bf16.vlgmr.msra.gmra.mrb[0].mxu1 %v515_v30  ;;  %v487_v40 = vmax.f32 %v415_v33, 0.0 }
 0x11c   : > { %v421_v39 = vadd.f32 %v420_v38, %v2124_v17  ;;  %v488_v42 = vmax.f32 %v417_v35, 0.0 }
 0x11d   : > { %v489_v41 = vmax.f32 %v419_v37, 0.0 }
 0x11e   : > { %v490_v43 = vmax.f32 %v421_v39, 0.0 }
 0x11f   : > { %v517_v44 = vpack.c.bf16 %v489_v41, %v487_v40 }
 0x120   : > { %v518_v45 = vpack.c.bf16 %v490_v43, %v488_v42  ;;  %v424_v46 = vpop.f32.mrb[8].mxu0 }
 0x121   : > { %v425_v47 = vadd.f32 %v424_v46, %v2120_v16  ;;  %v426_v48 = vpop.f32.mrb[9].mxu0 }
 0x122   : > { %v427_v49 = vadd.f32 %v426_v48, %v2124_v17  ;;  %v428_v50 = vpop.f32.mrb[10].mxu0  ;;  %777 = vmatprep.mubr.bf16.mxu1 %v518_v45 }
 0x123   : > { %v429_v51 = vadd.f32 %v428_v50, %v2120_v16  ;;  %v430_v52 = vpop.f32.mrb[11].mxu0  ;;  %778 = vmatmul.mubr.bf16.gmra.mrb[4].mxu1 %v517_v44  ;;  %v491_v54 = vmax.f32 %v425_v47, 0.0 }
 0x124   : > { %v431_v53 = vadd.f32 %v430_v52, %v2124_v17  ;;  %v492_v56 = vmax.f32 %v427_v49, 0.0 }
 0x125   : > { %v493_v55 = vmax.f32 %v429_v51, 0.0 }
 0x126   : > { %v494_v57 = vmax.f32 %v431_v53, 0.0 }
 0x127   : > { %v519_v58 = vpack.c.bf16 %v493_v55, %v491_v54 }
 0x128   : > { %v520_v59 = vpack.c.bf16 %v494_v57, %v492_v56  ;;  %v434_v60 = vpop.f32.mrb[12].mxu0 }
 0x129   : > { %v435_v61 = vadd.f32 %v434_v60, %v2120_v16  ;;  %v436_v62 = vpop.f32.mrb[13].mxu0 }
 0x12a   : > { %v437_v63 = vadd.f32 %v436_v62, %v2124_v17  ;;  %v438_v0 = vpop.f32.mrb[14].mxu0  ;;  %787 = vmatprep.mubr.bf16.mxu1 %v520_v59 }
 0x12b   : > { %v439_v1 = vadd.f32 %v438_v0, %v2120_v16  ;;  %v440_v2 = vpop.f32.mrb[15].mxu0  ;;  %788 = vmatmul.mubr.bf16.gmra.mrb[8].mxu1 %v519_v58  ;;  %v495_v4 = vmax.f32 %v435_v61, 0.0 }
 0x12c   : > { %v441_v3 = vadd.f32 %v440_v2, %v2124_v17  ;;  %v496_v6 = vmax.f32 %v437_v63, 0.0 }
 0x12d   : > { %v497_v5 = vmax.f32 %v439_v1, 0.0 }
 0x12e   : > { %v498_v7 = vmax.f32 %v441_v3, 0.0 }
 0x12f   : > { %v521_v8 = vpack.c.bf16 %v497_v5, %v495_v4 }
 0x130   : > { %v522_v9 = vpack.c.bf16 %v498_v7, %v496_v6  ;;  %v444_v10 = vpop.f32.mrb[16].mxu0  ;;  %v1682_v7 = vld [vmem:[#allocation2 + $0x78] sm:$0xff]  }
 0x131   : > { %v445_v11 = vadd.f32 %v444_v10, %v2120_v16  ;;  %v446_v14 = vpop.f32.mrb[17].mxu0  ;;  %1513 = vmatprep.subr.bf16.mxu0 %v1682_v7 }
 0x132   : > { %v447_v18 = vadd.f32 %v446_v14, %v2124_v17  ;;  %v448_v19 = vpop.f32.mrb[18].mxu0  ;;  %797 = vmatprep.mubr.bf16.mxu1 %v522_v9 }
 0x133   : > { %v449_v20 = vadd.f32 %v448_v19, %v2120_v16  ;;  %v450_v21 = vpop.f32.mrb[19].mxu0  ;;  %798 = vmatmul.mubr.bf16.gmra.mrb[12].mxu1 %v521_v8  ;;  %v499_v23 = vmax.f32 %v445_v11, 0.0  ;;  %v1683_v8 = vld [vmem:[#allocation2 + $0x38] sm:$0xff]  }
 0x134   : > { %v451_v22 = vadd.f32 %v450_v21, %v2124_v17  ;;  %v500_v25 = vmax.f32 %v447_v18, 0.0  ;;  %1514 = vmatpush3.bf16.msra.mxu0 %v1683_v8 }
 0x135   : > { %v501_v24 = vmax.f32 %v449_v20, 0.0 }
 0x136   : > { %v502_v26 = vmax.f32 %v451_v22, 0.0 }
 0x137   : > { %v523_v27 = vpack.c.bf16 %v501_v24, %v499_v23 }
 0x138   : > { %v524_v28 = vpack.c.bf16 %v502_v26, %v500_v25  ;;  %v454_v29 = vpop.f32.mrb[20].mxu0 }
 0x139   : > { %v455_v30 = vadd.f32 %v454_v29, %v2120_v16  ;;  %v456_v31 = vpop.f32.mrb[21].mxu0 }
 0x13a   : > { %v457_v32 = vadd.f32 %v456_v31, %v2124_v17  ;;  %v458_v33 = vpop.f32.mrb[22].mxu0  ;;  %807 = vmatprep.mubr.bf16.mxu1 %v524_v28 }
 0x13b   : > { %v459_v34 = vadd.f32 %v458_v33, %v2120_v16  ;;  %v460_v35 = vpop.f32.mrb[23].mxu0  ;;  %808 = vmatmul.mubr.bf16.gmra.mrb[16].mxu1 %v523_v27  ;;  %v503_v37 = vmax.f32 %v455_v30, 0.0 }
 0x13c   : > { %v461_v36 = vadd.f32 %v460_v35, %v2124_v17  ;;  %v504_v39 = vmax.f32 %v457_v32, 0.0 }
 0x13d   : > { %v505_v38 = vmax.f32 %v459_v34, 0.0 }
 0x13e   : > { %v506_v40 = vmax.f32 %v461_v36, 0.0 }
 0x13f   : > { %v525_v41 = vpack.c.bf16 %v505_v38, %v503_v37 }
 0x140   : > { %v526_v42 = vpack.c.bf16 %v506_v40, %v504_v39  ;;  %v464_v43 = vpop.f32.mrb[24].mxu0 }
 0x141   : > { %v465_v44 = vadd.f32 %v464_v43, %v2120_v16  ;;  %v466_v45 = vpop.f32.mrb[25].mxu0 }
 0x142   : > { %v467_v46 = vadd.f32 %v466_v45, %v2124_v17  ;;  %v468_v47 = vpop.f32.mrb[26].mxu0  ;;  %817 = vmatprep.mubr.bf16.mxu1 %v526_v42 }
 0x143   : > { %v469_v48 = vadd.f32 %v468_v47, %v2120_v16  ;;  %v470_v49 = vpop.f32.mrb[27].mxu0  ;;  %818 = vmatmul.mubr.bf16.gmra.mrb[20].mxu1 %v525_v41  ;;  %v507_v51 = vmax.f32 %v465_v44, 0.0 }
 0x144   : > { %v471_v50 = vadd.f32 %v470_v49, %v2124_v17  ;;  %v508_v53 = vmax.f32 %v467_v46, 0.0 }
 0x145   : > { %v509_v52 = vmax.f32 %v469_v48, 0.0 }
 0x146   : > { %v510_v54 = vmax.f32 %v471_v50, 0.0 }
 0x147   : > { %v527_v55 = vpack.c.bf16 %v509_v52, %v507_v51 }
 0x148   : > { %v528_v56 = vpack.c.bf16 %v510_v54, %v508_v53  ;;  %v474_v57 = vpop.f32.mrb[28].mxu0 }
 0x149   : > { %v475_v58 = vadd.f32 %v474_v57, %v2120_v16  ;;  %v476_v59 = vpop.f32.mrb[29].mxu0 }
 0x14a   : > { %v477_v60 = vadd.f32 %v476_v59, %v2124_v17  ;;  %v478_v61 = vpop.f32.mrb[30].mxu0  ;;  %827 = vmatprep.mubr.bf16.mxu1 %v528_v56 }
 0x14b   : > { %v479_v62 = vadd.f32 %v478_v61, %v2120_v16  ;;  %v480_v63 = vpop.f32.mrb[31].mxu0  ;;  %828 = vmatmul.mubr.bf16.gmra.mrb[24].mxu1 %v527_v55  ;;  %v511_v1 = vmax.f32 %v475_v58, 0.0  ;;  %v563_v16 = vld [vmem:[%s2427_s4] sm:$0x3] }
 0x14c   : > { %v481_v0 = vadd.f32 %v480_v63, %v2124_v17  ;;  %v512_v3 = vmax.f32 %v477_v60, 0.0  ;;  %v2163_v9 = vrot.slane %v563_v16, %v325_v13  ;;  %v2167_v17 = vrot.slane %v563_v16, %v329_v15 }
 0x14d   : > { %v513_v2 = vmax.f32 %v479_v62, 0.0 }
 0x14e   : > { %v514_v4 = vmax.f32 %v481_v0, 0.0 }
 0x14f   : > { %v529_v5 = vpack.c.bf16 %v513_v2, %v511_v1 }
 0x150   : > { %v530_v6 = vpack.c.bf16 %v514_v4, %v512_v3 }
 0x152   : > { %837 = vmatprep.mubr.bf16.mxu1 %v530_v6 }
 0x153   : > { %838 = vmatmul.mubr.bf16.gmra.mrb[28].mxu1 %v529_v5 }
 0x1ee   : > { %v769_v10 = vpop.f32.mrb[0].mxu1 }
 0x1ef   : > { %v770_v11 = vadd.f32 %v769_v10, %v2163_v9  ;;  %v771_v14 = vpop.f32.mrb[1].mxu1 }
 0x1f0   : > { %v772_v18 = vadd.f32 %v771_v14, %v2167_v17  ;;  %v773_v19 = vpop.f32.mrb[2].mxu1 }
 0x1f1   : > { %v774_v20 = vadd.f32 %v773_v19, %v2163_v9  ;;  %v775_v21 = vpop.f32.mrb[3].mxu1  ;;  %v848_v23 = vmax.f32 %v770_v11, 0.0 }
 0x1f2   : > { %v776_v22 = vadd.f32 %v775_v21, %v2167_v17  ;;  %v849_v13 = vmax.f32 %v772_v18, 0.0 }
 0x1f3   : > { %v850_v24 = vmax.f32 %v774_v20, 0.0 }
 0x1f4   : > { %v851_v25 = vmax.f32 %v776_v22, 0.0 }
 0x1f5   : > { %v880_v26 = vpack.c.bf16 %v850_v24, %v848_v23 }
 0x1f6   : > { %v881_v12 = vpack.c.bf16 %v851_v25, %v849_v13  ;;  %v779_v15 = vpop.f32.mrb[4].mxu1 }
 0x1f7   : > { %v780_v27 = vadd.f32 %v779_v15, %v2163_v9  ;;  %v781_v28 = vpop.f32.mrb[5].mxu1 }
 0x1f8   : > { %v782_v29 = vadd.f32 %v781_v28, %v2167_v17  ;;  %v783_v30 = vpop.f32.mrb[6].mxu1  ;;  %1063 = vmatprep.mubr.bf16.mxu0 %v881_v12 }
 0x1f9   : > { %v784_v31 = vadd.f32 %v783_v30, %v2163_v9  ;;  %v785_v32 = vpop.f32.mrb[7].mxu1  ;;  %1064 = vmatmul.mubr.bf16.vlgmr.msra.gmra.mrb[32].mxu0 %v880_v26  ;;  %v852_v34 = vmax.f32 %v780_v27, 0.0 }
 0x1fa   : > { %v786_v33 = vadd.f32 %v785_v32, %v2167_v17  ;;  %v853_v36 = vmax.f32 %v782_v29, 0.0 }
 0x1fb   : > { %v854_v35 = vmax.f32 %v784_v31, 0.0 }
 0x1fc   : > { %v855_v37 = vmax.f32 %v786_v33, 0.0 }
 0x1fd   : > { %v882_v38 = vpack.c.bf16 %v854_v35, %v852_v34 }
 0x1fe   : > { %v883_v39 = vpack.c.bf16 %v855_v37, %v853_v36  ;;  %v789_v40 = vpop.f32.mrb[8].mxu1 }
 0x1ff   : > { %v790_v41 = vadd.f32 %v789_v40, %v2163_v9  ;;  %v791_v42 = vpop.f32.mrb[9].mxu1 }
 0x200   : > { %v792_v43 = vadd.f32 %v791_v42, %v2167_v17  ;;  %v793_v44 = vpop.f32.mrb[10].mxu1  ;;  %1071 = vmatprep.mubr.bf16.mxu0 %v883_v39 }
 0x201   : > { %v794_v45 = vadd.f32 %v793_v44, %v2163_v9  ;;  %v795_v46 = vpop.f32.mrb[11].mxu1  ;;  %1072 = vmatmul.mubr.bf16.gmra.mrb[36].mxu0 %v882_v38  ;;  %v856_v48 = vmax.f32 %v790_v41, 0.0 }
 0x202   : > { %v796_v47 = vadd.f32 %v795_v46, %v2167_v17  ;;  %v857_v50 = vmax.f32 %v792_v43, 0.0 }
 0x203   : > { %v858_v49 = vmax.f32 %v794_v45, 0.0 }
 0x204   : > { %v859_v51 = vmax.f32 %v796_v47, 0.0 }
 0x205   : > { %v884_v52 = vpack.c.bf16 %v858_v49, %v856_v48 }
 0x206   : > { %v885_v53 = vpack.c.bf16 %v859_v51, %v857_v50  ;;  %v799_v54 = vpop.f32.mrb[12].mxu1 }
 0x207   : > { %v800_v55 = vadd.f32 %v799_v54, %v2163_v9  ;;  %v801_v56 = vpop.f32.mrb[13].mxu1 }
 0x208   : > { %v802_v57 = vadd.f32 %v801_v56, %v2167_v17  ;;  %v803_v58 = vpop.f32.mrb[14].mxu1  ;;  %1079 = vmatprep.mubr.bf16.mxu0 %v885_v53 }
 0x209   : > { %v804_v59 = vadd.f32 %v803_v58, %v2163_v9  ;;  %v805_v60 = vpop.f32.mrb[15].mxu1  ;;  %1080 = vmatmul.mubr.bf16.gmra.mrb[40].mxu0 %v884_v52  ;;  %v860_v62 = vmax.f32 %v800_v55, 0.0 }
 0x20a   : > { %v806_v61 = vadd.f32 %v805_v60, %v2167_v17  ;;  %v861_v0 = vmax.f32 %v802_v57, 0.0 }
 0x20b   : > { %v862_v63 = vmax.f32 %v804_v59, 0.0 }
 0x20c   : > { %v863_v1 = vmax.f32 %v806_v61, 0.0 }
 0x20d   : > { %v886_v2 = vpack.c.bf16 %v862_v63, %v860_v62 }
 0x20e   : > { %v887_v3 = vpack.c.bf16 %v863_v1, %v861_v0  ;;  %v809_v4 = vpop.f32.mrb[16].mxu1  ;;  %v2204_v0 = vld [vmem:[%s2429_s6] ss:$0 sm:$0xff] }
 0x20f   : > { %v810_v5 = vadd.f32 %v809_v4, %v2163_v9  ;;  %v811_v6 = vpop.f32.mrb[17].mxu1 }
 0x210   : > { %v812_v7 = vadd.f32 %v811_v6, %v2167_v17  ;;  %v813_v8 = vpop.f32.mrb[18].mxu1  ;;  %1087 = vmatprep.mubr.bf16.mxu0 %v887_v3 }
 0x211   : > { %v814_v16 = vadd.f32 %v813_v8, %v2163_v9  ;;  %v815_v10 = vpop.f32.mrb[19].mxu1  ;;  %1088 = vmatmul.mubr.bf16.gmra.mrb[44].mxu0 %v886_v2  ;;  %v864_v14 = vmax.f32 %v810_v5, 0.0 }
 0x212   : > { %v816_v11 = vadd.f32 %v815_v10, %v2167_v17  ;;  %v865_v19 = vmax.f32 %v812_v7, 0.0 }
 0x213   : > { %v866_v18 = vmax.f32 %v814_v16, 0.0 }
 0x214   : > { %v867_v20 = vmax.f32 %v816_v11, 0.0 }
 0x215   : > { %v888_v21 = vpack.c.bf16 %v866_v18, %v864_v14 }
 0x216   : > { %v889_v22 = vpack.c.bf16 %v867_v20, %v865_v19  ;;  %v819_v23 = vpop.f32.mrb[20].mxu1 }
 0x217   : > { %v820_v24 = vadd.f32 %v819_v23, %v2163_v9  ;;  %v821_v13 = vpop.f32.mrb[21].mxu1 }
 0x218   : > { %v822_v25 = vadd.f32 %v821_v13, %v2167_v17  ;;  %v823_v26 = vpop.f32.mrb[22].mxu1  ;;  %1095 = vmatprep.mubr.bf16.mxu0 %v889_v22 }
 0x219   : > { %v824_v12 = vadd.f32 %v823_v26, %v2163_v9  ;;  %v825_v15 = vpop.f32.mrb[23].mxu1  ;;  %1096 = vmatmul.mubr.bf16.gmra.mrb[48].mxu0 %v888_v21  ;;  %v868_v28 = vmax.f32 %v820_v24, 0.0 }
 0x21a   : > { %v826_v27 = vadd.f32 %v825_v15, %v2167_v17  ;;  %v869_v30 = vmax.f32 %v822_v25, 0.0 }
 0x21b   : > { %v870_v29 = vmax.f32 %v824_v12, 0.0 }
 0x21c   : > { %v871_v31 = vmax.f32 %v826_v27, 0.0 }
 0x21d   : > { %v890_v32 = vpack.c.bf16 %v870_v29, %v868_v28 }
 0x21e   : > { %v891_v33 = vpack.c.bf16 %v871_v31, %v869_v30  ;;  %v829_v34 = vpop.f32.mrb[24].mxu1 }
 0x21f   : > { %v830_v35 = vadd.f32 %v829_v34, %v2163_v9  ;;  %v831_v36 = vpop.f32.mrb[25].mxu1 }
 0x220   : > { %v832_v37 = vadd.f32 %v831_v36, %v2167_v17  ;;  %v833_v38 = vpop.f32.mrb[26].mxu1  ;;  %1103 = vmatprep.mubr.bf16.mxu0 %v891_v33 }
 0x221   : > { %v834_v39 = vadd.f32 %v833_v38, %v2163_v9  ;;  %v835_v40 = vpop.f32.mrb[27].mxu1  ;;  %1104 = vmatmul.mubr.bf16.gmra.mrb[52].mxu0 %v890_v32  ;;  %v872_v42 = vmax.f32 %v830_v35, 0.0 }
 0x222   : > { %v836_v41 = vadd.f32 %v835_v40, %v2167_v17  ;;  %v873_v44 = vmax.f32 %v832_v37, 0.0 }
 0x223   : > { %v874_v43 = vmax.f32 %v834_v39, 0.0 }
 0x224   : > { %v875_v45 = vmax.f32 %v836_v41, 0.0 }
 0x225   : > { %v892_v46 = vpack.c.bf16 %v874_v43, %v872_v42 }
 0x226   : > { %v893_v47 = vpack.c.bf16 %v875_v45, %v873_v44  ;;  %v839_v48 = vpop.f32.mrb[28].mxu1 }
 0x227   : > { %v840_v49 = vadd.f32 %v839_v48, %v2163_v9  ;;  %v841_v50 = vpop.f32.mrb[29].mxu1 }
 0x228   : > { %v842_v51 = vadd.f32 %v841_v50, %v2167_v17  ;;  %v843_v52 = vpop.f32.mrb[30].mxu1  ;;  %1111 = vmatprep.mubr.bf16.mxu0 %v893_v47 }
 0x229   : > { %v844_v53 = vadd.f32 %v843_v52, %v2163_v9  ;;  %v845_v54 = vpop.f32.mrb[31].mxu1  ;;  %1112 = vmatmul.mubr.bf16.gmra.mrb[56].mxu0 %v892_v46  ;;  %v876_v56 = vmax.f32 %v840_v49, 0.0 }
 0x22a   : > { %v846_v55 = vadd.f32 %v845_v54, %v2167_v17  ;;  %v877_v58 = vmax.f32 %v842_v51, 0.0 }
 0x22b   : > { %v878_v57 = vmax.f32 %v844_v53, 0.0 }
 0x22c   : > { %v879_v59 = vmax.f32 %v846_v55, 0.0 }
 0x22d   : > { %v894_v60 = vpack.c.bf16 %v878_v57, %v876_v56 }
 0x22e   : > { %v895_v61 = vpack.c.bf16 %v879_v59, %v877_v58 }
 0x230   : > { %1119 = vmatprep.mubr.bf16.mxu0 %v895_v61 }
 0x231   : > { %1120 = vmatmul.mubr.bf16.gmra.mrb[60].mxu0 %v894_v60 }
 0x2cc   : > { %v1515_v62 = vpop.f32.mrb[32].mxu0 }
 0x2cd   : > { %v1516_v63 = vpop.f32.mrb[33].mxu0 }
 0x2ce   : > { %v1517_v9 = vadd.f32 %v1516_v63, %v1515_v62  ;;  %v1518_v1 = vpop.f32.mrb[34].mxu0 }
 0x2cf   : > { %v1519_v2 = vpop.f32.mrb[35].mxu0 }
 0x2d0   : > { %v1520_v3 = vadd.f32 %v1519_v2, %v1518_v1  ;;  %v2207_v17 = vadd.f32 %v1517_v9, %v2204_v0 }
 0x2d2   : > { %1128 = vmax.xlane.f32.xlu0 %v2207_v17  ;;  %v2211_v5 = vadd.f32 %v1520_v3, %v2204_v0 }
 0x2d4   : > { %v1521_v4 = vpop.f32.mrb[36].mxu0 }
 0x2d5   : > { %v1522_v6 = vpop.f32.mrb[37].mxu0 }
 0x2d6   : > { %v1523_v7 = vadd.f32 %v1522_v6, %v1521_v4  ;;  %v1524_v8 = vpop.f32.mrb[38].mxu0  ;;  %1130 = vmax.xlane.f32.xlu0 %v2211_v5 }
 0x2d7   : > { %v1525_v16 = vpop.f32.mrb[39].mxu0 }
 0x2d8   : > { %v1526_v10 = vadd.f32 %v1525_v16, %v1524_v8  ;;  %v2215_v11 = vadd.f32 %v1523_v7, %v2204_v0 }
 0x2da   : > { %1132 = vmax.xlane.f32.xlu1 %v2215_v11  ;;  %v2219_v18 = vadd.f32 %v1526_v10, %v2204_v0 }
 0x2dc   : > { %v1527_v14 = vpop.f32.mrb[40].mxu0 }
 0x2dd   : > { %v1528_v19 = vpop.f32.mrb[41].mxu0 }
 0x2de   : > { %v1529_v20 = vadd.f32 %v1528_v19, %v1527_v14  ;;  %v1530_v21 = vpop.f32.mrb[42].mxu0  ;;  %1134 = vmax.xlane.f32.xlu1 %v2219_v18 }
 0x2df   : > { %v1531_v22 = vpop.f32.mrb[43].mxu0 }
 0x2e0   : > { %v1532_v23 = vadd.f32 %v1531_v22, %v1530_v21  ;;  %v2223_v24 = vadd.f32 %v1529_v20, %v2204_v0 }
 0x2e2   : > { %1136 = vmax.xlane.f32.xlu0 %v2223_v24  ;;  %v2227_v13 = vadd.f32 %v1532_v23, %v2204_v0 }
 0x2e4   : > { %v1533_v25 = vpop.f32.mrb[44].mxu0  ;;  %1138 = vmax.xlane.f32.xlu1 %v2227_v13 }
 0x2e5   : > { %v1534_v26 = vpop.f32.mrb[45].mxu0 }
 0x2e6   : > { %v1535_v12 = vadd.f32 %v1534_v26, %v1533_v25  ;;  %v1536_v15 = vpop.f32.mrb[46].mxu0 }
 0x2e7   : > { %v1537_v27 = vpop.f32.mrb[47].mxu0 }
 0x2e8   : > { %v1538_v28 = vadd.f32 %v1537_v27, %v1536_v15  ;;  %v2231_v29 = vadd.f32 %v1535_v12, %v2204_v0 }
 0x2ea   : > { %1140 = vmax.xlane.f32.xlu0 %v2231_v29  ;;  %v2235_v30 = vadd.f32 %v1538_v28, %v2204_v0 }
 0x2ec   : > { %v1539_v31 = vpop.f32.mrb[48].mxu0  ;;  %1142 = vmax.xlane.f32.xlu1 %v2235_v30 }
 0x2ed   : > { %v1540_v32 = vpop.f32.mrb[49].mxu0 }
 0x2ee   : > { %v1541_v33 = vadd.f32 %v1540_v32, %v1539_v31  ;;  %v1542_v34 = vpop.f32.mrb[50].mxu0 }
 0x2ef   : > { %v1543_v35 = vpop.f32.mrb[51].mxu0 }
 0x2f0   : > { %v1544_v36 = vadd.f32 %v1543_v35, %v1542_v34  ;;  %v2239_v37 = vadd.f32 %v1541_v33, %v2204_v0 }
 0x2f2   : > { %1144 = vmax.xlane.f32.xlu0 %v2239_v37  ;;  %v2243_v38 = vadd.f32 %v1544_v36, %v2204_v0 }
 0x2f4   : > { %v1545_v39 = vpop.f32.mrb[52].mxu0  ;;  %1146 = vmax.xlane.f32.xlu1 %v2243_v38 }
 0x2f5   : > { %v1546_v40 = vpop.f32.mrb[53].mxu0 }
 0x2f6   : > { %v1547_v41 = vadd.f32 %v1546_v40, %v1545_v39  ;;  %v1548_v42 = vpop.f32.mrb[54].mxu0 }
 0x2f7   : > { %v1549_v43 = vpop.f32.mrb[55].mxu0 }
 0x2f8   : > { %v1550_v44 = vadd.f32 %v1549_v43, %v1548_v42  ;;  %v2247_v45 = vadd.f32 %v1547_v41, %v2204_v0 }
 0x2fa   : > { %1148 = vmax.xlane.f32.xlu0 %v2247_v45  ;;  %v2251_v46 = vadd.f32 %v1550_v44, %v2204_v0 }
 0x2fc   : > { %v1551_v47 = vpop.f32.mrb[56].mxu0  ;;  %1150 = vmax.xlane.f32.xlu1 %v2251_v46 }
 0x2fd   : > { %v1552_v48 = vpop.f32.mrb[57].mxu0 }
 0x2fe   : > { %v1553_v49 = vadd.f32 %v1552_v48, %v1551_v47  ;;  %v1554_v50 = vpop.f32.mrb[58].mxu0 }
 0x2ff   : > { %v1555_v51 = vpop.f32.mrb[59].mxu0 }
 0x300   : > { %v1556_v52 = vadd.f32 %v1555_v51, %v1554_v50  ;;  %v2255_v53 = vadd.f32 %v1553_v49, %v2204_v0 }
 0x302   : > { %1152 = vmax.xlane.f32.xlu0 %v2255_v53  ;;  %v2259_v54 = vadd.f32 %v1556_v52, %v2204_v0 }
 0x304   : > { %v1557_v55 = vpop.f32.mrb[60].mxu0  ;;  %1154 = vmax.xlane.f32.xlu1 %v2259_v54 }
 0x305   : > { %v1558_v56 = vpop.f32.mrb[61].mxu0 }
 0x306   : > { %v1559_v57 = vadd.f32 %v1558_v56, %v1557_v55  ;;  %v1560_v58 = vpop.f32.mrb[62].mxu0 }
 0x307   : > { %v1561_v59 = vpop.f32.mrb[63].mxu0 }
 0x308   : > { %v1562_v60 = vadd.f32 %v1561_v59, %v1560_v58  ;;  %v2263_v61 = vadd.f32 %v1559_v57, %v2204_v0 }
 0x30a   : > { %1156 = vmax.xlane.f32.xlu0 %v2263_v61  ;;  %v2267_v62 = vadd.f32 %v1562_v60, %v2204_v0 }
 0x30c   : > { %1158 = vmax.xlane.f32.xlu1 %v2267_v62 }
 0x35f   : > { %v1129_v63 = vpop.xlane.xlu0 %1128 }
 0x360   : > { %v1160_v9 = vsub.f32 %v2207_v17, %v1129_v63 }
 0x362   : > { %v1176_v1 = vmul.f32 1.442695, %v1160_v9 }
 0x363   : > { %v1131_v2 = vpop.xlane.xlu0 %1130 }
 0x364   : > { %1684 = vpow2.f32 %v1176_v1  ;;  %v1161_v3 = vsub.f32 %v2211_v5, %v1131_v2 }
 0x366   : > { %v1178_v4 = vmul.f32 1.442695, %v1161_v3 }
 0x367   : > { %v1133_v6 = vpop.xlane.xlu1 %1132 }
 0x368   : > { %1686 = vpow2.f32 %v1178_v4  ;;  %v1162_v7 = vsub.f32 %v2215_v11, %v1133_v6 }
 0x36a   : > { %v1180_v8 = vmul.f32 1.442695, %v1162_v7 }
 0x36b   : > { %v1135_v16 = vpop.xlane.xlu1 %1134 }
 0x36c   : > { %1688 = vpow2.f32 %v1180_v8  ;;  %v1163_v0 = vsub.f32 %v2219_v18, %v1135_v16 }
 0x36e   : > { %v2274_v10 = vpop.eup %1684  ;;  %v1182_v14 = vmul.f32 1.442695, %v1163_v0 }
 0x36f   : > { %1208 = vadd.xlane.f32.xlu0 %v2274_v10  ;;  %v1137_v17 = vpop.xlane.xlu0 %1136 }
 0x370   : > { %1690 = vpow2.f32 %v1182_v14  ;;  %v1164_v19 = vsub.f32 %v2223_v24, %v1137_v17 }
 0x371   : > { %v1139_v5 = vpop.xlane.xlu1 %1138 }
 0x372   : > { %v2278_v20 = vpop.eup %1686  ;;  %v1184_v21 = vmul.f32 1.442695, %v1164_v19  ;;  %v1165_v11 = vsub.f32 %v2227_v13, %v1139_v5 }
 0x373   : > { %1210 = vadd.xlane.f32.xlu1 %v2278_v20 }
 0x374   : > { %1692 = vpow2.f32 %v1184_v21  ;;  %v1186_v22 = vmul.f32 1.442695, %v1165_v11 }
 0x376   : > { %v2282_v18 = vpop.eup %1688  ;;  %1694 = vpow2.f32 %v1186_v22 }
 0x377   : > { %1212 = vadd.xlane.f32.xlu0 %v2282_v18  ;;  %v1141_v23 = vpop.xlane.xlu0 %1140 }
 0x378   : > { %v1166_v25 = vsub.f32 %v2231_v29, %v1141_v23 }
 0x379   : > { %v1143_v26 = vpop.xlane.xlu1 %1142 }
 0x37a   : > { %v2286_v24 = vpop.eup %1690  ;;  %v1188_v12 = vmul.f32 1.442695, %v1166_v25  ;;  %v1167_v15 = vsub.f32 %v2235_v30, %v1143_v26 }
 0x37b   : > { %1214 = vadd.xlane.f32.xlu1 %v2286_v24 }
 0x37c   : > { %1696 = vpow2.f32 %v1188_v12  ;;  %v1190_v13 = vmul.f32 1.442695, %v1167_v15 }
 0x37e   : > { %v2290_v27 = vpop.eup %1692  ;;  %1698 = vpow2.f32 %v1190_v13 }
 0x37f   : > { %1216 = vadd.xlane.f32.xlu0 %v2290_v27  ;;  %v1145_v28 = vpop.xlane.xlu0 %1144 }
 0x380   : > { %v2293_v31 = vpop.eup %1694  ;;  %v1168_v29 = vsub.f32 %v2239_v37, %v1145_v28 }
 0x381   : > { %v1147_v32 = vpop.xlane.xlu1 %1146  ;;  %1218 = vadd.xlane.f32.xlu1 %v2293_v31 }
 0x382   : > { %v1192_v33 = vmul.f32 1.442695, %v1168_v29  ;;  %v1169_v30 = vsub.f32 %v2243_v38, %v1147_v32 }
 0x384   : > { %1700 = vpow2.f32 %v1192_v33  ;;  %v1194_v34 = vmul.f32 1.442695, %v1169_v30 }
 0x386   : > { %v2298_v35 = vpop.eup %1696  ;;  %1702 = vpow2.f32 %v1194_v34 }
 0x387   : > { %1220 = vadd.xlane.f32.xlu0 %v2298_v35  ;;  %v1149_v36 = vpop.xlane.xlu0 %1148 }
 0x388   : > { %v2301_v39 = vpop.eup %1698  ;;  %v1170_v40 = vsub.f32 %v2247_v45, %v1149_v36 }
 0x389   : > { %v1151_v41 = vpop.xlane.xlu1 %1150  ;;  %1222 = vadd.xlane.f32.xlu1 %v2301_v39 }
 0x38a   : > { %v1196_v37 = vmul.f32 1.442695, %v1170_v40  ;;  %v1171_v42 = vsub.f32 %v2251_v46, %v1151_v41 }
 0x38c   : > { %1704 = vpow2.f32 %v1196_v37  ;;  %v1198_v38 = vmul.f32 1.442695, %v1171_v42 }
 0x38e   : > { %v2306_v43 = vpop.eup %1700  ;;  %1706 = vpow2.f32 %v1198_v38 }
 0x38f   : > { %1224 = vadd.xlane.f32.xlu0 %v2306_v43  ;;  %v1153_v44 = vpop.xlane.xlu0 %1152 }
 0x390   : > { %v2309_v47 = vpop.eup %1702  ;;  %v1172_v48 = vsub.f32 %v2255_v53, %v1153_v44 }
 0x391   : > { %v1155_v49 = vpop.xlane.xlu1 %1154  ;;  %1226 = vadd.xlane.f32.xlu1 %v2309_v47 }
 0x392   : > { %v1200_v45 = vmul.f32 1.442695, %v1172_v48  ;;  %v1173_v50 = vsub.f32 %v2259_v54, %v1155_v49 }
 0x394   : > { %1708 = vpow2.f32 %v1200_v45  ;;  %v1202_v46 = vmul.f32 1.442695, %v1173_v50 }
 0x396   : > { %v2314_v51 = vpop.eup %1704  ;;  %1710 = vpow2.f32 %v1202_v46 }
 0x397   : > { %1228 = vadd.xlane.f32.xlu0 %v2314_v51  ;;  %v1157_v52 = vpop.xlane.xlu0 %1156 }
 0x398   : > { %v2317_v55 = vpop.eup %1706  ;;  %v1174_v56 = vsub.f32 %v2263_v61, %v1157_v52 }
 0x399   : > { %v1159_v57 = vpop.xlane.xlu1 %1158  ;;  %1230 = vadd.xlane.f32.xlu1 %v2317_v55 }
 0x39a   : > { %v1204_v53 = vmul.f32 1.442695, %v1174_v56  ;;  %v1175_v58 = vsub.f32 %v2267_v62, %v1159_v57 }
 0x39c   : > { %1712 = vpow2.f32 %v1204_v53  ;;  %v1206_v54 = vmul.f32 1.442695, %v1175_v58 }
 0x39e   : > { %v2322_v59 = vpop.eup %1708  ;;  %1714 = vpow2.f32 %v1206_v54 }
 0x39f   : > { %1232 = vadd.xlane.f32.xlu0 %v2322_v59 }
 0x3a0   : > { %v2325_v60 = vpop.eup %1710 }
 0x3a1   : > { %1234 = vadd.xlane.f32.xlu1 %v2325_v60 }
 0x3a6   : > { %v2328_v61 = vpop.eup %1712 }
 0x3a7   : > { %1236 = vadd.xlane.f32.xlu0 %v2328_v61 }
 0x3a8   : > { %v2331_v63 = vpop.eup %1714 }
 0x3a9   : > { %1238 = vadd.xlane.f32.xlu1 %v2331_v63 }
 0x3fc   : > { %v1209_v62 = vpop.xlane.xlu0 %1208 }
 0x3fd   : > { %1716 = vrcp.f32 %v1209_v62 }
 0x400   : > { %v1211_v9 = vpop.xlane.xlu1 %1210 }
 0x401   : > { %1718 = vrcp.f32 %v1211_v9 }
 0x404   : > { %v1213_v1 = vpop.xlane.xlu0 %1212 }
 0x405   : > { %1720 = vrcp.f32 %v1213_v1 }
 0x407   : > { %v1717_v2 = vpop.eup %1716 }
 0x408   : > { %v1256_v3 = vmul.f32 %v1717_v2, %v1209_v62  ;;  %v1215_v4 = vpop.xlane.xlu1 %1214 }
 0x409   : > { %1722 = vrcp.f32 %v1215_v4 }
 0x40a   : > { %v1272_v6 = vsub.f32 2.0, %v1256_v3 }
 0x40b   : > { %v1719_v7 = vpop.eup %1718 }
 0x40c   : > { %v1288_v8 = vmul.f32 %v1717_v2, %v1272_v6  ;;  %v1257_v16 = vmul.f32 %v1719_v7, %v1211_v9  ;;  %v1217_v0 = vpop.xlane.xlu0 %1216 }
 0x40d   : > { %1724 = vrcp.f32 %v1217_v0 }
 0x40e   : > { %v1304_v14 = vmul.f32 %v2274_v10, %v1288_v8  ;;  %v1273_v17 = vsub.f32 2.0, %v1257_v16  ;;  %v1219_v19 = vpop.xlane.xlu1 %1218 }
 0x40f   : > { %v1721_v5 = vpop.eup %1720  ;;  %1726 = vrcp.f32 %v1219_v19 }
 0x410   : > { %1320 = vst [vmem:[%s2338_s17] sm:$0xff] %v1304_v14  ;;  %v1289_v21 = vmul.f32 %v1719_v7, %v1273_v17  ;;  %v1258_v11 = vmul.f32 %v1721_v5, %v1213_v1 }
 0x412   : > { %v1305_v22 = vmul.f32 %v2278_v20, %v1289_v21  ;;  %v1274_v23 = vsub.f32 2.0, %v1258_v11 }
 0x413   : > { %v1723_v25 = vpop.eup %1722 }
 0x414   : > { %1321 = vst [vmem:[%s2338_s17 + $0x8] sm:$0xff] %v1305_v22  ;;  %v1290_v26 = vmul.f32 %v1721_v5, %v1274_v23  ;;  %v1259_v10 = vmul.f32 %v1723_v25, %v1215_v4  ;;  %v1221_v12 = vpop.xlane.xlu0 %1220 }
 0x415   : > { %1728 = vrcp.f32 %v1221_v12 }
 0x416   : > { %v1306_v15 = vmul.f32 %v2282_v18, %v1290_v26  ;;  %v1275_v13 = vsub.f32 2.0, %v1259_v10  ;;  %v1223_v28 = vpop.xlane.xlu1 %1222 }
 0x417   : > { %v1725_v29 = vpop.eup %1724  ;;  %1730 = vrcp.f32 %v1223_v28 }
 0x418   : > { %1322 = vst [vmem:[%s2338_s17 + $0x10] sm:$0xff] %v1306_v15  ;;  %v1291_v32 = vmul.f32 %v1723_v25, %v1275_v13  ;;  %v1260_v33 = vmul.f32 %v1725_v29, %v1217_v0 }
 0x419   : > { %v1727_v30 = vpop.eup %1726 }
 0x41a   : > { %v1307_v20 = vmul.f32 %v2286_v24, %v1291_v32  ;;  %v1276_v34 = vsub.f32 2.0, %v1260_v33  ;;  %v1261_v36 = vmul.f32 %v1727_v30, %v1219_v19 }
 0x41c   : > { %1323 = vst [vmem:[%s2338_s17 + $0x18] sm:$0xff] %v1307_v20  ;;  %v1292_v40 = vmul.f32 %v1725_v29, %v1276_v34  ;;  %v1277_v41 = vsub.f32 2.0, %v1261_v36  ;;  %v1225_v37 = vpop.xlane.xlu0 %1224 }
 0x41d   : > { %1732 = vrcp.f32 %v1225_v37 }
 0x41e   : > { %v1308_v18 = vmul.f32 %v2290_v27, %v1292_v40  ;;  %v1293_v42 = vmul.f32 %v1727_v30, %v1277_v41  ;;  %v1227_v38 = vpop.xlane.xlu1 %1226 }
 0x41f   : > { %v1729_v44 = vpop.eup %1728  ;;  %1734 = vrcp.f32 %v1227_v38 }
 0x420   : > { %1324 = vst [vmem:[%s2338_s17 + $0x20] sm:$0xff] %v1308_v18  ;;  %v1309_v48 = vmul.f32 %v2293_v31, %v1293_v42  ;;  %v1262_v49 = vmul.f32 %v1729_v44, %v1221_v12 }
 0x421   : > { %v1731_v24 = vpop.eup %1730 }
 0x422   : > { %1325 = vst [vmem:[%s2338_s17 + $0x28] sm:$0xff] %v1309_v48  ;;  %v1278_v45 = vsub.f32 2.0, %v1262_v49  ;;  %v1263_v50 = vmul.f32 %v1731_v24, %v1223_v28 }
 0x424   : > { %v1294_v46 = vmul.f32 %v1729_v44, %v1278_v45  ;;  %v1279_v52 = vsub.f32 2.0, %v1263_v50  ;;  %v1229_v56 = vpop.xlane.xlu0 %1228 }
 0x425   : > { %1736 = vrcp.f32 %v1229_v56 }
 0x426   : > { %v1310_v27 = vmul.f32 %v2298_v35, %v1294_v46  ;;  %v1295_v57 = vmul.f32 %v1731_v24, %v1279_v52  ;;  %v1231_v53 = vpop.xlane.xlu1 %1230 }
 0x427   : > { %v1733_v58 = vpop.eup %1732  ;;  %1738 = vrcp.f32 %v1231_v53 }
 0x428   : > { %1326 = vst [vmem:[%s2338_s17 + $0x30] sm:$0xff] %v1310_v27  ;;  %v1311_v31 = vmul.f32 %v2301_v39, %v1295_v57  ;;  %v1264_v54 = vmul.f32 %v1733_v58, %v1225_v37 }
 0x429   : > { %v1735_v62 = vpop.eup %1734 }
 0x42a   : > { %1327 = vst [vmem:[%s2338_s17 + $0x38] sm:$0xff] %v1311_v31  ;;  %v1280_v9 = vsub.f32 2.0, %v1264_v54  ;;  %v1265_v1 = vmul.f32 %v1735_v62, %v1227_v38 }
 0x42c   : > { %v1296_v2 = vmul.f32 %v1733_v58, %v1280_v9  ;;  %v1281_v3 = vsub.f32 2.0, %v1265_v1  ;;  %v1233_v4 = vpop.xlane.xlu0 %1232 }
 0x42d   : > { %1740 = vrcp.f32 %v1233_v4 }
 0x42e   : > { %v1312_v35 = vmul.f32 %v2306_v43, %v1296_v2  ;;  %v1297_v6 = vmul.f32 %v1735_v62, %v1281_v3  ;;  %v1235_v7 = vpop.xlane.xlu1 %1234 }
 0x42f   : > { %v1737_v8 = vpop.eup %1736  ;;  %1742 = vrcp.f32 %v1235_v7 }
 0x430   : > { %1328 = vst [vmem:[%s2338_s17 + $0x40] sm:$0xff] %v1312_v35  ;;  %v1313_v39 = vmul.f32 %v2309_v47, %v1297_v6  ;;  %v1266_v16 = vmul.f32 %v1737_v8, %v1229_v56 }
 0x431   : > { %v1739_v0 = vpop.eup %1738 }
 0x432   : > { %1329 = vst [vmem:[%s2338_s17 + $0x48] sm:$0xff] %v1313_v39  ;;  %v1282_v14 = vsub.f32 2.0, %v1266_v16  ;;  %v1267_v17 = vmul.f32 %v1739_v0, %v1231_v53 }
 0x434   : > { %v1298_v19 = vmul.f32 %v1737_v8, %v1282_v14  ;;  %v1283_v5 = vsub.f32 2.0, %v1267_v17  ;;  %v1237_v21 = vpop.xlane.xlu0 %1236 }
 0x435   : > { %1744 = vrcp.f32 %v1237_v21 }
 0x436   : > { %v1314_v43 = vmul.f32 %v2314_v51, %v1298_v19  ;;  %v1299_v11 = vmul.f32 %v1739_v0, %v1283_v5  ;;  %v1239_v22 = vpop.xlane.xlu1 %1238 }
 0x437   : > { %v1741_v23 = vpop.eup %1740  ;;  %1746 = vrcp.f32 %v1239_v22 }
 0x438   : > { %1330 = vst [vmem:[%s2338_s17 + $0x50] sm:$0xff] %v1314_v43  ;;  %v1315_v47 = vmul.f32 %v2317_v55, %v1299_v11  ;;  %v1268_v25 = vmul.f32 %v1741_v23, %v1233_v4 }
 0x439   : > { %v1743_v26 = vpop.eup %1742 }
 0x43a   : > { %1331 = vst [vmem:[%s2338_s17 + $0x58] sm:$0xff] %v1315_v47  ;;  %v1284_v10 = vsub.f32 2.0, %v1268_v25  ;;  %v1269_v12 = vmul.f32 %v1743_v26, %v1235_v7 }
 0x43c   : > { %v1300_v15 = vmul.f32 %v1741_v23, %v1284_v10  ;;  %v1285_v13 = vsub.f32 2.0, %v1269_v12 }
 0x43e   : > { %v1316_v51 = vmul.f32 %v2322_v59, %v1300_v15  ;;  %v1301_v28 = vmul.f32 %v1743_v26, %v1285_v13 }
 0x43f   : > { %v1745_v29 = vpop.eup %1744 }
 0x440   : > { %1332 = vst [vmem:[%s2338_s17 + $0x60] sm:$0xff] %v1316_v51  ;;  %v1317_v32 = vmul.f32 %v2325_v60, %v1301_v28  ;;  %v1270_v33 = vmul.f32 %v1745_v29, %v1237_v21 }
 0x441   : > { %v1747_v55 = vpop.eup %1746 }
 0x442   : > { %1333 = vst [vmem:[%s2338_s17 + $0x68] sm:$0xff] %v1317_v32  ;;  %v1286_v30 = vsub.f32 2.0, %v1270_v33  ;;  %v1271_v20 = vmul.f32 %v1747_v55, %v1239_v22 }
 0x444   : > { %v1302_v34 = vmul.f32 %v1745_v29, %v1286_v30  ;;  %v1287_v36 = vsub.f32 2.0, %v1271_v20 }
 0x446   : > { %v1318_v59 = vmul.f32 %v2328_v61, %v1302_v34  ;;  %v1303_v40 = vmul.f32 %v1747_v55, %v1287_v36 }
 0x448   : > { %1334 = vst [vmem:[%s2338_s17 + $0x70] sm:$0xff] %v1318_v59  ;;  %v1319_v60 = vmul.f32 %v2331_v63, %v1303_v40 }
 0x44a   : > { %1335 = vst [vmem:[%s2338_s17 + $0x78] sm:$0xff] %v1319_v60 }
 0x44b   : > { %1789 = shalt.err (!%p1786_p7)
}
 0x44c   : > { %s1790_s29 = scalar_lea.hbm %s2373_s20, 2048  ;;  %s1794_s14 = scalar_lea.hbm %s2430_s7, 4096 }
 0x44d   : > { %p1791_p8 = scmp.ne.s32.totalorder %s2373_s20, %s1790_s29  ;;  %p1795_p1 = scmp.lt.u32.totalorder %s2373_s20, %s2430_s7 }
 0x44e   : > { %p1796_p0 = scmp.lt.u32.totalorder %s1794_s14, %s1790_s29  ;;  %p1798_p6 = scmp.lt.u32.totalorder %s1790_s29, %s2373_s20 }
 0x44f   : > { %p1792_p11 = pnand %p1791_p8, %p2441_p9 }
 0x450   : > { %p1797_p5 = por %p1796_p0, %p1795_p1 }
 0x451   : > { %p1793_p13 = pneg %p1792_p11 }
 0x452   : > { %p1799_p10 = por %p1798_p6, %p1797_p5 }
 0x454   : > { %p1800_p12 = pnand %p1799_p10, %p1793_p13 }
 0x456   : > { %1803 = shalt.err (!%p1800_p12)
}
 0x457   : > { %s1849_s16 = smov 128   ;;  %s1850_s19 = smov 8  }
 0x458   : > { %1567 = dma.vmem_to_hbm [thread:$0]  (%p2441_p9), %s2375_s15, 2048, %s2373_s20, %s2382_s28, %s1849_s16, %s1849_s16, %s1850_s19  }
 0x459 PF: > { %p1579_p2 = scmp.ge.s32.totalorder %s1842_s27, 2  ;;  %s1365_s13 = sand.u32 1, %s1830_s24  }
 0x45a   : > { %p2442_p3 = scmp.ne.s32.totalorder %s2435_s12, 0  ;;  %s1366_s21 = scalar_lea.sflag [#allocation4], %s1365_s13 }
 0x45c   : > { %p1574_p4 = pnand %p1579_p2, %p2442_p3 }
 0x45e   : > { %1825 = dma.done.wait (!%p1574_p4), %s1366_s21, 2048  }
 0x45f   : > { %1827 = vsyncadd (!%p1574_p4), %s1366_s21, 4294965248  ;;  %p18_p7 = scmp.ge.s32.totalorder %s1916_s30, 4   ;;  %s2443_s24 = smov %s1834_s25 }
 0x460   : > { %s2444_s25 = smov %s1838_s26  ;;  %s2445_s26 = smov %s1927_s10 }
 0x461   : > { %s2446_s27 = smov %s1916_s30  ;;  %20 = sbr.rel (!%p18_p7) target bundleno = 4 (0x4), region = 88 }
 0x468   :  { %1371 = vsyncpa [#allocation3], 1 }
 0x469   :  { %1373 = vsyncpa [#allocation3 + $0x1], 1 }
 0x46a   :  { %1374 = vsyncpa [#allocation4], 1 }
 0x46b   :  { %1376 = vsyncpa [#allocation4 + $0x1], 1 }

</bundles_post_ra>
